<compile_context>
chip_gen: v7x
topology: tpu7x:2x2x1
jax: 0.10.0
libtpu: 0.0.40
codegen_flags: <defaults>
</compile_context>

<pallas_src>
import jax
import jax.numpy as jnp
from jax.experimental import pallas as pl
from jax.experimental.pallas import tpu as pltpu

LANES = 128                 # vreg lane width
SUBLANES = 8                # f32 sublane count -> (8, 128) tiling granule
GRANULE = SUBLANES * LANES  # 1024 elements


def _round_up(a: int, b: int) -> int:
    return ((a + b - 1) // b) * b


def _logistic_kernel(w_ref, b_ref, x_ref, o_ref):
    # w_ref, b_ref: (1, 1) f32 scalars in SMEM.
    # x_ref, o_ref: (tile_rows, 128) f32 lane-dense tiles in VMEM.
    # Linear(1,1) + sigmoid is purely elementwise: VPU mul/add + EUP logistic.
    w = w_ref[0, 0]
    b = b_ref[0, 0]
    o_ref[...] = jax.nn.sigmoid(x_ref[...] * w + b)


def _choose_tile_rows(rows: int, max_tile_rows: int) -> int:
    """Pick an (8,128)-aligned row tile.

    * multiple of 8 sublanes (BlockSpec constraint), even for odd user input,
    * capped at max_tile_rows (2-in + 2-out double buffers stay ~4 MiB by
      default, far under every generation's scoped VMEM incl. v7x's budget),
    * at least 2 grid blocks whenever there is enough work, so both v7x
      TensorCores get fed on the "parallel" axis.
    """
    max_tile_rows = max(SUBLANES, (max_tile_rows // SUBLANES) * SUBLANES)
    if rows <= SUBLANES:
        return rows  # block == full array extent
    half = _round_up(pl.cdiv(rows, 2), SUBLANES)  # forces >= 2 blocks
    return min(max_tile_rows, half)


def logistic_model(x, weight, bias, *, max_tile_rows=2048, min_pallas_elems=65536):
    """sigmoid(x @ weight.T + bias) for x:(N,1), weight:(1,1), bias:(1,)."""
    n = x.shape[0]
    w_s = weight.reshape(1, 1).astype(jnp.float32)
    b_s = bias.reshape(1, 1).astype(jnp.float32)

    # Small-N fast path: a single fused XLA elementwise op beats paying kernel
    # launch + pad/slice plumbing for a few KiB of data.
    if n < min_pallas_elems:
        return jax.nn.sigmoid(x.astype(jnp.float32) * w_s[0, 0] + b_s[0, 0])

    flat = x.reshape(-1).astype(jnp.float32)

    if n % GRANULE == 0:
        # Zero-copy path: (N,1) -> (N/128, 128) is a layout-free reshape; no
        # extra HBM pass before the kernel.
        rows = n // LANES
        x2d = flat.reshape(rows, LANES)
    else:
        # Pad only up to the next (8,128) granule (< 1024 elements).  Rows stay
        # 8-aligned; the grid still allows a partial last *block*, so we never
        # round the array up to a full tile's worth of rows.
        rows = _round_up(pl.cdiv(n, LANES), SUBLANES)
        x2d = jnp.pad(flat, (0, rows * LANES - n)).reshape(rows, LANES)

    tile_rows = _choose_tile_rows(rows, max_tile_rows)
    grid = (pl.cdiv(rows, tile_rows),)  # partial last block handled by Pallas

    out2d = pl.pallas_call(
        _logistic_kernel,
        out_shape=jax.ShapeDtypeStruct((rows, LANES), jnp.float32),
        grid=grid,
        in_specs=[
            pl.BlockSpec(memory_space=pltpu.MemorySpace.SMEM),   # weight scalar
            pl.BlockSpec(memory_space=pltpu.MemorySpace.SMEM),   # bias scalar
            pl.BlockSpec((tile_rows, LANES), lambda i: (i, 0)),  # x tile
        ],
        out_specs=pl.BlockSpec((tile_rows, LANES), lambda i: (i, 0)),
        compiler_params=pltpu.CompilerParams(
            dimension_semantics=("parallel",),  # megacore split on v7x
        ),
    )(w_s, b_s, x2d)

    # Drop any tail padding; for the aligned path this slice is a no-op.
    return out2d.reshape(-1)[:n].reshape(n, 1)


if __name__ == "__main__":
    key = jax.random.PRNGKey(0)
    kx, kw, kb = jax.random.split(key, 3)

    weight = jax.random.uniform(kw, (1, 1), dtype=jnp.float32, minval=-1.0, maxval=1.0)
    bias = jax.random.uniform(kb, (1,), dtype=jnp.float32, minval=-1.0, maxval=1.0)

    def ref(x):
        return jax.nn.sigmoid(x @ weight.T + bias)

    # 1) Tiny batch like the tutorial (N=8): served by the fused-XLA fast path.
    x_small = jax.random.normal(kx, (8, 1), dtype=jnp.float32)
    y_small = jax.block_until_ready(logistic_model(x_small, weight, bias))
    assert y_small.shape == (8, 1)
    assert jnp.allclose(y_small, ref(x_small), atol=1e-5)

    # 2) Pallas kernel, 1024-aligned N -> zero-copy reshape; small tile forces a
    #    2-block grid with a partial last block (rows=24, tile=16).
    x_aligned = jax.random.normal(kx, (3072, 1), dtype=jnp.float32)
    y_aligned = jax.block_until_ready(
        logistic_model(x_aligned, weight, bias, max_tile_rows=16, min_pallas_elems=0)
    )
    assert y_aligned.shape == (3072, 1)
    assert jnp.allclose(y_aligned, ref(x_aligned), atol=1e-5)

    # 3) Pallas kernel, unaligned N -> tail-only pad (<1024 elems), sliced off.
    x_ragged = jax.random.normal(kx, (1234, 1), dtype=jnp.float32)
    y_ragged = jax.block_until_ready(
        logistic_model(x_ragged, weight, bias, min_pallas_elems=0)
    )
    assert y_ragged.shape == (1234, 1)
    assert jnp.allclose(y_ragged, ref(x_ragged), atol=1e-5)

    print("KERNEL_OK")
</pallas_src>

<mosaic_0001>
module attributes {stable_mosaic.version = 11 : i64} {
  func.func @_logistic_kernel(%arg0: i32, %arg1: memref<1x1xf32, #tpu.memory_space<smem>>, %arg2: memref<1x1xf32, #tpu.memory_space<smem>>, %arg3: memref<16x128xf32, #tpu.memory_space<vmem>>, %arg4: memref<16x128xf32, #tpu.memory_space<vmem>>) attributes {dimension_semantics = [#tpu.dimension_semantics<parallel>], iteration_bounds = array<i64: 2>, scalar_prefetch = 0 : i64, scratch_operands = 0 : i64, tpu.core_type = #tpu.core_type<tc>, window_params = [{transform_indices = @transform_0, window_bounds = array<i64: 1, 1>}, {transform_indices = @transform_1, window_bounds = array<i64: 1, 1>}, {transform_indices = @transform_2, window_bounds = array<i64: 16, 128>}, {transform_indices = @transform_3, window_bounds = array<i64: 16, 128>}]} {
    %c0 = arith.constant 0 : index
    %c0_0 = arith.constant 0 : index
    %0 = memref.load %arg1[%c0, %c0_0] : memref<1x1xf32, #tpu.memory_space<smem>>
    %c0_1 = arith.constant 0 : index
    %c0_2 = arith.constant 0 : index
    %1 = memref.load %arg2[%c0_1, %c0_2] : memref<1x1xf32, #tpu.memory_space<smem>>
    %c0_3 = arith.constant 0 : index
    %c0_4 = arith.constant 0 : index
    %2 = vector.load %arg3[%c0_3, %c0_4] : memref<16x128xf32, #tpu.memory_space<vmem>>, vector<16x128xf32>
    %3 = vector.broadcast %0 : f32 to vector<16x128xf32>
    %4 = arith.mulf %2, %3 : vector<16x128xf32>
    %5 = vector.broadcast %1 : f32 to vector<16x128xf32>
    %6 = arith.addf %4, %5 : vector<16x128xf32>
    %7 = arith.negf %6 : vector<16x128xf32>
    %8 = math.exp %7 : vector<16x128xf32>
    %cst = arith.constant 1.000000e+00 : f32
    %9 = vector.broadcast %cst : f32 to vector<16x128xf32>
    %10 = arith.addf %9, %8 : vector<16x128xf32>
    %11 = arith.divf %9, %10 : vector<16x128xf32>
    %c0_5 = arith.constant 0 : index
    %c0_6 = arith.constant 0 : index
    %12 = vector.load %arg4[%c0_5, %c0_6] : memref<16x128xf32, #tpu.memory_space<vmem>>, vector<16x128xf32>
    tpu.vector_store %arg4[%c0_5, %c0_6], %11 {strides = array<i32>} : memref<16x128xf32, #tpu.memory_space<vmem>>, vector<16x128xf32>,
    return
  }
  func.func @transform_0(%arg0: i32) -> (i32, i32) {
    %c0_i32 = arith.constant 0 : i32
    %c0_i32_0 = arith.constant 0 : i32
    %c0_i32_1 = arith.constant 0 : i32
    return %c0_i32, %c0_i32_0 : i32, i32
  }
  func.func @transform_1(%arg0: i32) -> (i32, i32) {
    %c0_i32 = arith.constant 0 : i32
    %c0_i32_0 = arith.constant 0 : i32
    %c0_i32_1 = arith.constant 0 : i32
    return %c0_i32, %c0_i32_0 : i32, i32
  }
  func.func @transform_2(%arg0: i32) -> (i32, i32) {
    %c0_i32 = arith.constant 0 : i32
    %c0_i32_0 = arith.constant 0 : i32
    return %arg0, %c0_i32 : i32, i32
  }
  func.func @transform_3(%arg0: i32) -> (i32, i32) {
    %c0_i32 = arith.constant 0 : i32
    %c0_i32_0 = arith.constant 0 : i32
    return %arg0, %c0_i32 : i32, i32
  }
}

</mosaic_0001>

<bundles_post_ra>
// kernel: tpu_custom_call.1
= control target key start
LH: loop header
LB: loop body
LE: loop exit
PB: predicated region body
PF: predicated region fallthrough
CT: control target
= control target key end

     0   :  { %s699_s0 = inlined_call_operand.<no memory space> [shape: f32[1,1], index: 0, kind: input, shape index: {}]   ;;  %s700_s1 = inlined_call_operand.<no memory space> [shape: f32[1,1], index: 1, kind: input, shape index: {}]   ;;  %s701_s2 = inlined_call_operand.hbm [shape: f32[24,128], index: 2, kind: input, shape index: {}]   ;;  %s702_s3 = inlined_call_operand.hbm [shape: f32[24,128], index: 3, kind: output, shape index: {}]  }
   0x1   :  { %8 = sst [smem:[#allocation2]] %s699_s0 }
   0x2   :  { %9 = sst [smem:[#allocation3]] %s700_s1 }
   0x3   :  { %10 = vsyncpa [#allocation5], 0 }
   0x4   :  { %12 = vsyncpa [#allocation5 + $0x1], 0 }
   0x5   :  { %13 = vsyncpa [#allocation6], 0 }
   0x6   :  { %15 = vsyncpa [#allocation6 + $0x1], 0  ;;  %s529_s16 = smov 0   ;;  %s531_s17 = smov 0  }
   0x7   :  { %s533_s18 = smov 0   ;;  %s535_s19 = smov 0  }
   0x8 LB: > { %s550_s0 = sadd.s32 4294967295, %s495_s19   ;;  %s324_s1 = sadd.s32 4294967294, %s495_s19   ;;  %s495_s19 = sphi %s535_s19, %s712_s19   ;;  %s491_s18 = sphi %s533_s18, %s711_s18   ;;  %s487_s17 = sphi %s531_s17, %s710_s17   ;;  %s483_s16 = sphi %s529_s16, %s709_s16  }
   0x9   : > { %s554_s20 = sadd.s32 1, %s495_s19   ;;  %s70_s21 = sadd.s32 1, %s491_s18 }
   0xa   : > { %s67_s22 = ssub.s32 %s495_s19, %s554_s20  ;;  %p77_p0 = scmp.ne.s32.totalorder %s491_s18, %s487_s17 }
   0xb   : > { %p68_p1 = scmp.eq.s32.totalorder %s67_s22, 0  ;;  %p78_p2 = scmp.eq.s32.totalorder %s495_s19, 0 }
   0xc   : > { %p83_p3 = scmp.ne.s32.totalorder %s487_s17, %s483_s16  ;;  %p84_p4 = scmp.eq.s32.totalorder %s550_s0, 0 }
   0xd   : > { %s566_s23 = scalar_select %p68_p1, %s491_s18, %s70_s21  }
   0xe   : > { %p79_p5 = por %p78_p2, %p77_p0  ;;  %p568_p6 = por %p84_p4, %p83_p3 }
   0xf   : > { %p107_p7 = scmp.eq.s32.totalorder %s550_s0, 1  ;;  %p113_p8 = scmp.eq.s32.totalorder %s324_s1, 1 }
  0x10   : > { %p703_p11 = scmp.ge.s32.totalorder %s495_s19, 2 }
  0x11   : > { %p573_p9 = por %p107_p7, %p77_p0  ;;  %p577_p10 = por %p113_p8, %p83_p3 }
  0x12   : > { %135 = sbr.rel (%p703_p11) target bundleno = 60 (0x3c), region = 24 }
  0x13   : > { %s706_s26 = scalar_select %p577_p10, 1, 0 }
  0x19   : > { %138 = sbr.rel (!%p79_p5) target bundleno = 60 (0x3c), region = 28  ;;  %s139_s27 = sand.u32 (%p79_p5), 1, %s491_s18  }
  0x1a   : > { %s328_s28 = sshll.u32 (%p79_p5), %s495_s19, 1  ;;  %s327_s29 = sshll.u32 (%p79_p5), %s139_s27, 4 }
  0x1b   : > { %s145_s30 = ssub.s32 (%p79_p5), 3, %s328_s28  ;;  %s589_s6 = scalar_lea.sflag (%p79_p5), [#allocation5], %s139_s27 }
  0x1c   : > { %p146_p12 = scmp.lt.s32.totalorder (%p79_p5), %s145_s30, 2  ;;  %s143_s7 = scalar_lea.vmem (%p79_p5), [#allocation4], %s327_s29 }
  0x20   : > { %s714_s30 = smov (!%p146_p12, %s145_s30), 2 }
  0x21   : > { %s586_s4 = sshll.u32 %s714_s30, 7 }
  0x22   : > { %s150_s5 = ssub.s32 256, %s586_s4 }
  0x23   : > { %151 = vsyncadd %s589_s6, %s150_s5  ;;  %p330_p13 = scmp.ne.s32.totalorder %s586_s4, 0  ;;  %s348_s8 = sshll.u32 %s495_s19, 8 }
  0x24   : > { %s597_s11 = scalar_lea.hbm %s701_s2, %s348_s8  ;;  %s156_s12 = sshll.u32 %s143_s7, 4  ;;  %s599_s12 = int_to_ptr.vmem [resolvable:$true] %s156_s12 }
  0x25   : > { %s401_s13 = scalar_lea.hbm %s597_s11, %s586_s4  ;;  %s405_s1 = scalar_lea.hbm %s701_s2, 384 }
  0x26   : > { %p402_p0 = scmp.ne.s32.totalorder %s597_s11, %s401_s13  ;;  %p406_p3 = scmp.lt.u32.totalorder %s597_s11, %s701_s2 }
  0x27   : > { %p407_p4 = scmp.lt.u32.totalorder %s405_s1, %s401_s13  ;;  %p409_p7 = scmp.lt.u32.totalorder %s401_s13, %s597_s11 }
  0x28   : > { %p403_p1 = pnand %p402_p0, %p330_p13 }
  0x29   : > { %p408_p5 = por %p407_p4, %p406_p3 }
  0x2a   : > { %p404_p2 = pneg %p403_p1 }
  0x2b   : > { %p410_p8 = por %p409_p7, %p408_p5 }
  0x2d   : > { %p411_p12 = pnand %p410_p8, %p404_p2 }
  0x2f   : > { %414 = shalt.err (!%p411_p12)
}
  0x30   : > { %s415_s27 = scalar_lea.vmem %s599_s12, %s586_s4  ;;  %s497_s28 = smov [#allocation4]  }
  0x31   : > { %p416_p0 = scmp.ne.s32.totalorder %s599_s12, %s415_s27  ;;  %s419_s29 = sshll.u32 %s497_s28, 4  ;;  %s420_s29 = int_to_ptr.vmem [resolvable:$false] %s419_s29 }
  0x32   : > { %s421_s30 = scalar_lea.vmem %s420_s29, 512  ;;  %p422_p10 = scmp.lt.s32.totalorder %s599_s12, %s420_s29 }
  0x33   : > { %p417_p1 = pnand %p416_p0, %p330_p13  ;;  %p423_p3 = scmp.lt.s32.totalorder %s421_s30, %s415_s27 }
  0x35   : > { %p418_p11 = pneg %p417_p1  ;;  %p424_p4 = por %p423_p3, %p422_p10 }
  0x37   : > { %p425_p5 = pnand %p424_p4, %p418_p11 }
  0x39   : > { %428 = shalt.err (!%p425_p5)
}
  0x3a   : > { %s498_s5 = smov 128   ;;  %s499_s7 = smov 8  }
  0x3b   : > { %162 = dma.hbm_to_vmem [thread:$0]  (%p330_p13), %s597_s11, %s586_s4, %s599_s12, %s589_s6, %s498_s5, %s498_s5, %s499_s7  }
  0x3c PF: > { %p334_p2 = scmp.ge.s32.totalorder %s495_s19, 1  ;;  %p164_p7 = scmp.lt.s32.totalorder %s495_s19, 3 }
  0x3e   : > { %p165_p8 = pnand %p334_p2, %p164_p7 }
  0x3f   : > { %s629_s8 = sand.u32 (!%p165_p8), 1, %s487_s17  }
  0x40   : > { %168 = sbr.rel (%p165_p8) target bundleno = 139 (0x8b), region = 32  ;;  %s335_s9 = sshll.u32 (!%p165_p8), %s629_s8, 4 }
  0x41   : > { %s171_s10 = scalar_lea.sflag (!%p165_p8), [#allocation5], %s629_s8  ;;  %s174_s13 = scalar_lea.vmem (!%p165_p8), [#allocation4], %s335_s9 }
  0x47   : > { %474 = dma.done.wait (%p568_p6), %s171_s10, 256  }
  0x48   : > { %476 = vsyncadd (%p568_p6), %s171_s10, 4294967040  ;;  %s207_s4 = sld [smem:[#allocation2]]  ;;  %v209_v0 = vld [vmem:[%s174_s13] sm:$0xff]  ;;  %v210_v1 = vld [vmem:[%s174_s13 + $0x8] sm:$0xff]  ;;  %s196_s24 = scalar_lea.vmem [#allocation7], %s335_s9 }
  0x49   : > { %s208_s6 = sld [smem:[#allocation3]]  ;;  %s232_s11 = scalar_lea.sflag [#allocation6], %s629_s8 }
  0x4a   : > { %s340_s12 = sshll.u32 (%p573_p9), %s550_s0, 1 }
  0x4b   : > { %s240_s14 = ssub.s32 (%p573_p9), 3, %s340_s12 }
  0x4c   : > { %p241_p6 = scmp.lt.s32.totalorder (%p573_p9), %s240_s14, 2 }
  0x4e   : > { %v211_v2 = vstv %s207_s4 }
  0x4f   : > { %v214_v3 = vstv %s208_s6  ;;  %v212_v4 = vmul.f32 %v211_v2, %v209_v0  ;;  %v213_v5 = vmul.f32 %v211_v2, %v210_v1 }
  0x51   : > { %v215_v6 = vadd.f32 %v214_v3, %v212_v4  ;;  %v216_v7 = vadd.f32 %v214_v3, %v213_v5 }
  0x53   : > { %v337_v8 = vmul.f32 -1.442695, %v215_v6  ;;  %v338_v9 = vmul.f32 -1.442695, %v216_v7 }
  0x55   : > { %393 = vpow2.f32 %v337_v8 }
  0x56   : > { %395 = vpow2.f32 %v338_v9 }
  0x5f   : > { %v394_v10 = vpop.eup %393 }
  0x60   : > { %v396_v11 = vpop.eup %395  ;;  %v223_v12 = vadd.f32 1.0, %v394_v10 }
  0x61   : > { %v224_v13 = vadd.f32 1.0, %v396_v11 }
  0x62   : > { %397 = vrcp.f32 %v223_v12 }
  0x63   : > { %399 = vrcp.f32 %v224_v13 }
  0x68   : > { %238 = sbr.rel (!%p573_p9) target bundleno = 139 (0x8b), region = 40 }
  0x6c   : > { %v398_v14 = vpop.eup %397 }
  0x6d   : > { %v400_v15 = vpop.eup %399  ;;  %229 = vst [vmem:[%s196_s24] sm:$0xff] %v398_v14 }
  0x6e   : > { %230 = vst [vmem:[%s196_s24 + $0x8] sm:$0xff] %v400_v15 }
  0x6f   : > { %s716_s14 = smov (!%p241_p6, %s240_s14), 2 }
  0x70   : > { %s641_s15 = sshll.u32 %s716_s14, 7 }
  0x71   : > { %s245_s1 = ssub.s32 256, %s641_s15 }
  0x72   : > { %246 = vsyncadd %s232_s11, %s245_s1  ;;  %p342_p10 = scmp.ne.s32.totalorder %s641_s15, 0  ;;  %s349_s21 = sshll.u32 %s550_s0, 8 }
  0x73   : > { %s651_s27 = scalar_lea.hbm %s702_s3, %s349_s21  ;;  %s251_s28 = sshll.u32 %s196_s24, 4  ;;  %s653_s28 = int_to_ptr.vmem [resolvable:$true] %s251_s28 }
  0x74   : > { %s429_s29 = scalar_lea.vmem %s653_s28, %s641_s15  ;;  %s500_s30 = smov [#allocation7]  }
  0x75   : > { %p430_p9 = scmp.ne.s32.totalorder %s653_s28, %s429_s29  ;;  %s433_s5 = sshll.u32 %s500_s30, 4  ;;  %s434_s5 = int_to_ptr.vmem [resolvable:$false] %s433_s5 }
  0x76   : > { %s435_s0 = scalar_lea.vmem %s434_s5, 512  ;;  %p436_p12 = scmp.lt.s32.totalorder %s653_s28, %s434_s5 }
  0x77   : > { %p431_p11 = pnand %p430_p9, %p342_p10  ;;  %p437_p0 = scmp.lt.s32.totalorder %s435_s0, %s429_s29 }
  0x79   : > { %p432_p13 = pneg %p431_p11  ;;  %p438_p1 = por %p437_p0, %p436_p12 }
  0x7b   : > { %p439_p3 = pnand %p438_p1, %p432_p13 }
  0x7d   : > { %442 = shalt.err (!%p439_p3)
}
  0x7e   : > { %s443_s7 = scalar_lea.hbm %s651_s27, %s641_s15  ;;  %s447_s13 = scalar_lea.hbm %s702_s3, 384 }
  0x7f   : > { %p444_p4 = scmp.ne.s32.totalorder %s651_s27, %s443_s7  ;;  %p448_p7 = scmp.lt.u32.totalorder %s651_s27, %s702_s3 }
  0x80   : > { %p449_p8 = scmp.lt.u32.totalorder %s447_s13, %s443_s7  ;;  %p451_p9 = scmp.lt.u32.totalorder %s443_s7, %s651_s27 }
  0x81   : > { %p445_p5 = pnand %p444_p4, %p342_p10 }
  0x82   : > { %p450_p6 = por %p449_p8, %p448_p7 }
  0x83   : > { %p446_p2 = pneg %p445_p5 }
  0x84   : > { %p452_p11 = por %p451_p9, %p450_p6 }
  0x86   : > { %p453_p13 = pnand %p452_p11, %p446_p2 }
  0x88   : > { %456 = shalt.err (!%p453_p13)
}
  0x89   : > { %s501_s24 = smov 128   ;;  %s502_s12 = smov 8  }
  0x8a   : > { %257 = dma.vmem_to_hbm [thread:$0]  (%p342_p10), %s653_s28, %s641_s15, %s651_s27, %s232_s11, %s501_s24, %s501_s24, %s502_s12  }
  0x8b PF: > { %s266_s14 = sand.u32 1, %s483_s16   ;;  %p707_p12 = scmp.ne.s32.totalorder %s706_s26, 0 }
  0x8c   : > { %p708_p0 = scmp.ge.s32.totalorder %s495_s19, 2  ;;  %s267_s1 = scalar_lea.sflag [#allocation6], %s266_s14 }
  0x8e   : > { %p353_p1 = pnand %p708_p0, %p707_p12 }
  0x90   : > { %478 = dma.done.wait (!%p353_p1), %s267_s1, 256  }
  0x91   : > { %480 = vsyncadd (!%p353_p1), %s267_s1, 4294967040  ;;  %p18_p3 = scmp.ge.s32.totalorder %s554_s20, 4   ;;  %s709_s16 = smov %s487_s17 }
  0x92   : > { %s710_s17 = smov %s491_s18  ;;  %s711_s18 = smov %s566_s23 }
  0x93   : > { %s712_s19 = smov %s554_s20  ;;  %20 = sbr.rel (!%p18_p3) target bundleno = 8 (0x8), region = 77 }
  0x9a   :  { %272 = vsyncpa [#allocation5], 1 }
  0x9b   :  { %274 = vsyncpa [#allocation5 + $0x1], 1 }
  0x9c   :  { %275 = vsyncpa [#allocation6], 1 }
  0x9d   :  { %277 = vsyncpa [#allocation6 + $0x1], 1 }

</bundles_post_ra>
